<compile_context>
chip_gen: v6e
topology: v6e:2x2x1
jax: 0.10.0
libtpu: 0.0.40
codegen_flags: <defaults>
</compile_context>

<pallas_src>
import jax
import jax.numpy as jnp
from jax import lax
from jax.experimental import pallas as pl
from jax.experimental.pallas import tpu as pltpu

NEG_SLOPE = 2.0
C_IN, C_OUT, KSIZE, PAD = 10, 2, 7, 7
_GEMM_DTYPE = jnp.bfloat16   # use jnp.float32 for bit-level conv parity


def _conv_bias_leaky_kernel(w_ref, a_ref, b_ref, o_ref):
    """One batch image per grid step.

    w_ref : (C_OUT, K)  _GEMM_DTYPE  -- flattened OIHW conv weight
    a_ref : (K, M)      _GEMM_DTYPE  -- im2col patches of this image
    b_ref : (C_OUT, 1)  f32          -- conv bias
    o_ref : (C_OUT, M)  f32
    """
    acc = jnp.dot(w_ref[...], a_ref[...], preferred_element_type=jnp.float32)
    acc = acc + b_ref[...]                       # bias broadcast over lanes
    # v4 = where(v1 > 0, v1, v1 * negative_slope)
    o_ref[...] = jnp.where(acc > 0, acc, acc * NEG_SLOPE).astype(o_ref.dtype)


@jax.jit
def conv_leaky_forward(x_nchw, weight_oihw, bias):
    """Equivalent of Model.forward: conv(10->2,k7,s1,p7) then where(v>0,v,2v)."""
    N, _, H, W = x_nchw.shape
    Ho = H + 2 * PAD - KSIZE + 1
    Wo = W + 2 * PAD - KSIZE + 1
    K = C_IN * KSIZE * KSIZE                     # 490
    M = Ho * Wo                                  # output pixels per image

    # Single fused XLA patch-extraction op.  Output channel ordering is
    # (ci, kh, kw)-major, i.e. exactly weight.reshape(C_OUT, K) order, and the
    # layout is already (N, K, Ho, Wo) -> a pure reshape gives the per-image
    # GEMM RHS with no transpose of the inflated data.
    patches = lax.conv_general_dilated_patches(
        x_nchw, filter_shape=(KSIZE, KSIZE), window_strides=(1, 1),
        padding=((PAD, PAD), (PAD, PAD)))
    a = patches.reshape(N, K, M).astype(_GEMM_DTYPE)
    w = weight_oihw.reshape(C_OUT, K).astype(_GEMM_DTYPE)
    b = bias.reshape(C_OUT, 1).astype(jnp.float32)

    itemsize = jnp.dtype(_GEMM_DTYPE).itemsize
    cost = pl.CostEstimate(
        flops=2 * C_OUT * K * N * M,
        transcendentals=0,
        bytes_accessed=(a.size + w.size) * itemsize + b.size * 4
                        + N * C_OUT * M * 4)

    out = pl.pallas_call(
        _conv_bias_leaky_kernel,
        out_shape=jax.ShapeDtypeStruct((N, C_OUT, M), jnp.float32),
        grid=(N,),
        in_specs=[
            pl.BlockSpec((C_OUT, K), lambda n: (0, 0)),        # weight (resident)
            pl.BlockSpec((None, K, M), lambda n: (n, 0, 0)),   # patches of image n
            pl.BlockSpec((C_OUT, 1), lambda n: (0, 0)),        # bias (resident)
        ],
        out_specs=pl.BlockSpec((None, C_OUT, M), lambda n: (n, 0, 0)),
        compiler_params=pltpu.CompilerParams(
            dimension_semantics=("parallel",)),
        cost_estimate=cost,
    )(w, a, b)

    # (N, C_OUT, Ho*Wo) -> NCHW: contiguous reshape, no transpose needed.
    return out.reshape(N, C_OUT, Ho, Wo)


if __name__ == "__main__":
    key = jax.random.PRNGKey(0)
    kx, kw, kb = jax.random.split(key, 3)

    # Deterministic "parameters" (same shapes as torch.nn.Conv2d(10, 2, 7))
    fan_in = C_IN * KSIZE * KSIZE
    bound = 1.0 / (fan_in ** 0.5)
    weight = jax.random.uniform(kw, (C_OUT, C_IN, KSIZE, KSIZE),
                                jnp.float32, -bound, bound)
    bias = jax.random.uniform(kb, (C_OUT,), jnp.float32, -bound, bound)

    # Small NCHW input consistent with the module (C_in = 10)
    x = jax.random.normal(kx, (2, C_IN, 16, 16), jnp.float32)

    out = jax.block_until_ready(conv_leaky_forward(x, weight, bias))

    # Reference: f32 XLA conv + bias + same elementwise op
    ref_conv = lax.conv_general_dilated(
        x, weight, window_strides=(1, 1),
        padding=((PAD, PAD), (PAD, PAD)),
        dimension_numbers=("NCHW", "OIHW", "NCHW"),
    ) + bias.reshape(1, C_OUT, 1, 1)
    ref = jnp.where(ref_conv > 0, ref_conv, ref_conv * NEG_SLOPE)

    assert out.shape == (2, C_OUT, 24, 24), out.shape
    # bf16 GEMM operands with f32 accumulation -> observed error ~1e-3.
    # (Set _GEMM_DTYPE = jnp.float32 above for tighter parity.)
    assert jnp.allclose(out, ref, atol=2e-2, rtol=2e-2), float(
        jnp.max(jnp.abs(out - ref)))
    print("KERNEL_OK")
</pallas_src>

<mosaic_0001>
module attributes {stable_mosaic.version = 11 : i64} {
  func.func @_conv_bias_leaky_kernel(%arg0: i32, %arg1: memref<2x490xbf16, #tpu.memory_space<vmem>>, %arg2: memref<1x490x576xbf16, #tpu.memory_space<vmem>>, %arg3: memref<2x1xf32, #tpu.memory_space<vmem>>, %arg4: memref<1x2x576xf32, #tpu.memory_space<vmem>>) attributes {dimension_semantics = [#tpu.dimension_semantics<parallel>], iteration_bounds = array<i64: 2>, scalar_prefetch = 0 : i64, scratch_operands = 0 : i64, tpu.core_type = #tpu.core_type<tc>, window_params = [{pipeline_mode = #tpu.pipeline_mode<synchronous>, transform_indices = @transform_0, window_bounds = array<i64: 2, 490>}, {transform_indices = @transform_1, window_bounds = array<i64: 1, 490, 576>}, {pipeline_mode = #tpu.pipeline_mode<synchronous>, transform_indices = @transform_2, window_bounds = array<i64: 2, 1>}, {transform_indices = @transform_3, window_bounds = array<i64: 1, 2, 576>}]} {
    %c0 = arith.constant 0 : index
    %c0_0 = arith.constant 0 : index
    %0 = vector.load %arg1[%c0, %c0_0] : memref<2x490xbf16, #tpu.memory_space<vmem>>, vector<2x490xbf16>
    %c0_1 = arith.constant 0 : index
    %c0_2 = arith.constant 0 : index
    %c0_3 = arith.constant 0 : index
    %1 = vector.load %arg2[%c0_1, %c0_2, %c0_3] : memref<1x490x576xbf16, #tpu.memory_space<vmem>>, vector<1x490x576xbf16>
    %2 = vector.shape_cast %1 : vector<1x490x576xbf16> to vector<490x576xbf16>
    %cst = arith.constant dense<0.000000e+00> : vector<2x576xf32>
    %3 = tpu.matmul %0, %2, %cst {dimension_numbers = #tpu.dot_dimension_numbers<[1], [0], [0], [1], [0, 0, 1, 1], [], []>} : vector<2x490xbf16>, vector<490x576xbf16>, vector<2x576xf32> -> vector<2x576xf32>
    %c0_4 = arith.constant 0 : index
    %c0_5 = arith.constant 0 : index
    %4 = vector.load %arg3[%c0_4, %c0_5] : memref<2x1xf32, #tpu.memory_space<vmem>>, vector<2x1xf32>
    %5 = vector.broadcast %4 : vector<2x1xf32> to vector<2x576xf32>
    %6 = arith.addf %3, %5 : vector<2x576xf32>
    %cst_6 = arith.constant 0.000000e+00 : f32
    %7 = vector.broadcast %cst_6 : f32 to vector<2x576xf32>
    %8 = arith.cmpf ogt, %6, %7 : vector<2x576xf32>
    %cst_7 = arith.constant 2.000000e+00 : f32
    %9 = vector.broadcast %cst_7 : f32 to vector<2x576xf32>
    %10 = arith.mulf %6, %9 : vector<2x576xf32>
    %11 = arith.select %8, %6, %10 : vector<2x576xi1>, vector<2x576xf32>
    %c0_8 = arith.constant 0 : index
    %c0_9 = arith.constant 0 : index
    %c0_10 = arith.constant 0 : index
    %12 = vector.load %arg4[%c0_8, %c0_9, %c0_10] : memref<1x2x576xf32, #tpu.memory_space<vmem>>, vector<1x2x576xf32>
    %13 = vector.shape_cast %12 : vector<1x2x576xf32> to vector<2x576xf32>
    %14 = vector.shape_cast %11 : vector<2x576xf32> to vector<1x2x576xf32>
    tpu.vector_store %arg4[%c0_8, %c0_9, %c0_10], %14 {strides = array<i32>} : memref<1x2x576xf32, #tpu.memory_space<vmem>>, vector<1x2x576xf32>,
    return
  }
  func.func @transform_0(%arg0: i32) -> (i32, i32) {
    %c0_i32 = arith.constant 0 : i32
    %c0_i32_0 = arith.constant 0 : i32
    %c0_i32_1 = arith.constant 0 : i32
    return %c0_i32, %c0_i32_0 : i32, i32
  }
  func.func @transform_1(%arg0: i32) -> (i32, i32, i32) {
    %c0_i32 = arith.constant 0 : i32
    %c0_i32_0 = arith.constant 0 : i32
    %c0_i32_1 = arith.constant 0 : i32
    return %arg0, %c0_i32, %c0_i32_0 : i32, i32, i32
  }
  func.func @transform_2(%arg0: i32) -> (i32, i32) {
    %c0_i32 = arith.constant 0 : i32
    %c0_i32_0 = arith.constant 0 : i32
    %c0_i32_1 = arith.constant 0 : i32
    return %c0_i32, %c0_i32_0 : i32, i32
  }
  func.func @transform_3(%arg0: i32) -> (i32, i32, i32) {
    %c0_i32 = arith.constant 0 : i32
    %c0_i32_0 = arith.constant 0 : i32
    %c0_i32_1 = arith.constant 0 : i32
    return %arg0, %c0_i32, %c0_i32_0 : i32, i32, i32
  }
}

</mosaic_0001>

<bundles_post_ra>
// kernel: conv_leaky_forward.1
= control target key start
LH: loop header
LB: loop body
LE: loop exit
PB: predicated region body
PF: predicated region fallthrough
CT: control target
= control target key end

     0   :  { %s2016_s12 = smov 0   ;;  %s2261_s0 = inlined_call_operand.vmem [shape: bf16[2,490], index: 0, kind: input, shape index: {}]   ;;  %s2262_s1 = inlined_call_operand.vmem [shape: bf16[2,490,576], index: 1, kind: input, shape index: {}]   ;;  %s2263_s2 = inlined_call_operand.vmem [shape: f32[2,1], index: 2, kind: input, shape index: {}]   ;;  %s2264_s3 = inlined_call_operand.vmem [shape: f32[2,2,576], index: 3, kind: output, shape index: {}]  }
   0x1 LB: > { %s1562_s13 = sadd.s32 4294967295, %s1991_s12   ;;  %p1566_p0 = scmp.ge.s32.totalorder %s1991_s12, 1  ;;  %s1991_s12 = sphi %s2016_s12, %s13_s12  }
   0x2   : > { %p137_p1 = scmp.lt.s32.totalorder %s1991_s12, 3 }
   0x4   : > { %p138_p2 = pnand %p1566_p0, %p137_p1 }
   0x5   : > { %p161_p3 = scmp.lt.s32.totalorder (!%p138_p2), %s1562_s13, 1 }
   0x6   : > { %141 = sbr.rel (%p138_p2) target bundleno = 402 (0x192), region = 32 }
   0xb   : > { %v377_v0 = vlaneseq  ;;  %v2027_v1 = vld.sshfl [vmem:[%s2261_s0] sm:$0x33 pattern:$0x75316420]  ;;  %s2266_s13 = smov (!%p161_p3, %s1562_s13), 1  ;;  %v1994_v8 = vmov 0  }
   0xc   : > { %v1993_v2 = vmov 1966171168   ;;  %s1754_s16 = smul.u32 1240, %s2266_s13  ;;  %v373_v5 = vcombine.high %v2027_v1, %v2027_v1  ;;  %1767 = vset.pattern.permute.xlu0 %v1994_v8  ;;  %vm1194_vm0 = vcmask 867328   ;;  %vm1198_vm1 = vcmask 1044480  }
   0xd   : > { %v375_v3 = vunpack.c.l.s4 %v1993_v2  ;;  %v2031_v4 = vshrl.u32 %v377_v0, 7  ;;  %s1755_s22 = smul.u32 10, %s2266_s13  ;;  %vm1505_vm7 = vcmask 517120  }
   0xe   : > { %s2039_s19 = scalar_lea.vmem %s2262_s1, %s1754_s16 }
   0xf   : > { %v376_v6 = vunpack.c.0.s8 %v375_v3  ;;  %v1768_v9 = vld [vmem:[%s2039_s19 + $0x11c] ss:$20 sps:$4 sm:$0xff]   ;;  %v1772_v12 = vld [vmem:[%s2039_s19 + $0x118] ss:$20 sps:$4 sm:$0xff]   ;;  %v1774_v14 = vld [vmem:[%s2039_s19 + $0xf4] ss:$20 sps:$4 sm:$0xff]   ;;  %s170_s25 = scalar_lea.vmem %s2264_s3, %s1755_s22 }
  0x10   : > { %v1770_v10 = vld [vmem:[%s2039_s19 + $0x39c] ss:$20 sps:$4 sm:$0xff]   ;;  %1214 = vmatprep.subr.bf16.mxu0 %v1768_v9  ;;  %v1773_v13 = vld [vmem:[%s2039_s19 + $0x398] ss:$20 sps:$4 sm:$0xff]   ;;  %v1776_v16 = vld [vmem:[%s2039_s19 + $0x374] ss:$20 sps:$4 sm:$0xff]  }
  0x11   : > { %v2042_v7 = vsub.s32 %v376_v6, %v2031_v4  ;;  %1255 = vmatprep.subr.bf16.mxu1 %v1770_v10  ;;  %1215 = vmatpush1.bf16.msra.mxu0 %v1772_v12  ;;  %v1778_v17 = vld [vmem:[%s2039_s19 + $0xf0] ss:$20 sps:$4 sm:$0xff]   ;;  %v1780_v19 = vld [vmem:[%s2039_s19 + $0xcc] ss:$20 sps:$4 sm:$0xff]   ;;  %v1784_v21 = vld [vmem:[%s2039_s19 + $0xc8] ss:$20 sps:$4 sm:$0xff]  }
  0x12   : > { %1256 = vmatpush1.bf16.msra.mxu1 %v1773_v13  ;;  %1216 = vmatprep.subr.bf16.mxu0 %v1774_v14  ;;  %v1779_v18 = vld [vmem:[%s2039_s19 + $0x370] ss:$20 sps:$4 sm:$0xff]   ;;  %v1782_v20 = vld [vmem:[%s2039_s19 + $0x34c] ss:$20 sps:$4 sm:$0xff]   ;;  %v1785_v22 = vld [vmem:[%s2039_s19 + $0x348] ss:$20 sps:$4 sm:$0xff]  }
  0x13   : > { %v2048_v11 = vrot.slane %v373_v5, %v2042_v7  ;;  %1257 = vmatprep.subr.bf16.mxu1 %v1776_v16  ;;  %v1786_v23 = vld [vmem:[%s2039_s19 + $0xa4] ss:$20 sps:$4 sm:$0xff]   ;;  %v1790_v25 = vld [vmem:[%s2039_s19 + $0xa0] ss:$20 sps:$4 sm:$0xff]   ;;  %v1792_v27 = vld [vmem:[%s2039_s19 + $0x7c] ss:$20 sps:$4 sm:$0xff]   ;;  %v2119_v13 = vrot.slane %v2027_v1, %v2042_v7 }
  0x14   : > { %v1788_v24 = vld [vmem:[%s2039_s19 + $0x324] ss:$20 sps:$4 sm:$0xff]   ;;  %v1791_v26 = vld [vmem:[%s2039_s19 + $0x320] ss:$20 sps:$4 sm:$0xff]   ;;  %v1794_v28 = vld [vmem:[%s2039_s19 + $0x2fc] ss:$20 sps:$4 sm:$0xff]  }
  0x15   : > { %v2055_v15 = vcombine.high %v2048_v11, %v2048_v11  ;;  %1246 = vmatprep.mubr.bf16.mxu0 %v2048_v11  ;;  %1217 = vmatpush1.bf16.msra.mxu0 %v1778_v17  ;;  %v1796_v29 = vld [vmem:[%s2039_s19 + $0x78] ss:$20 sps:$4 sm:$0xff]   ;;  %v1798_v31 = vld [vmem:[%s2039_s19 + $0x54] ss:$20 sps:$4 sm:$0xff]   ;;  %v1802_v33 = vld [vmem:[%s2039_s19 + $0x50] ss:$20 sps:$4 sm:$0xff]   ;;  %v2125_v17 = vcombine.high %v2119_v13, %v2119_v13 }
  0x16   : > { %1258 = vmatpush1.bf16.msra.mxu1 %v1779_v18  ;;  %1218 = vmatprep.subr.bf16.mxu0 %v1780_v19  ;;  %v1797_v30 = vld [vmem:[%s2039_s19 + $0x2f8] ss:$20 sps:$4 sm:$0xff]   ;;  %v1800_v32 = vld [vmem:[%s2039_s19 + $0x2d4] ss:$20 sps:$4 sm:$0xff]   ;;  %v1803_v34 = vld [vmem:[%s2039_s19 + $0x2d0] ss:$20 sps:$4 sm:$0xff]  }
  0x17   : > { %1726 = vmatprep.mubr.msk.bf16.mxu1 %vm1194_vm0, %v2055_v15  ;;  %1259 = vmatprep.subr.bf16.mxu1 %v1782_v20  ;;  %v1804_v35 = vld [vmem:[%s2039_s19 + $0x2c] ss:$20 sps:$4 sm:$0xff]   ;;  %v1808_v37 = vld [vmem:[%s2039_s19 + $0x28] ss:$20 sps:$4 sm:$0xff]   ;;  %v1810_v39 = vld [vmem:[%s2039_s19 + $0x4] ss:$20 sps:$4 sm:$0xff]  }
  0x18   : > { %v1806_v36 = vld [vmem:[%s2039_s19 + $0x2ac] ss:$20 sps:$4 sm:$0xff]   ;;  %v1809_v38 = vld [vmem:[%s2039_s19 + $0x2a8] ss:$20 sps:$4 sm:$0xff]   ;;  %v1812_v40 = vld [vmem:[%s2039_s19 + $0x284] ss:$20 sps:$4 sm:$0xff]  }
  0x19   : > { %1219 = vmatpush1.bf16.msra.mxu0 %v1784_v21  ;;  %v1814_v41 = vld [vmem:[%s2039_s19] ss:$20 sps:$4 sm:$0xff]   ;;  %v1816_v43 = vld [vmem:[%s2039_s19 + $0x25c] ss:$20 sps:$4 sm:$0xff]   ;;  %v1820_v46 = vld [vmem:[%s2039_s19 + $0x258] ss:$20 sps:$4 sm:$0xff]  }
  0x1a   : > { %1260 = vmatpush1.bf16.msra.mxu1 %v1785_v22  ;;  %1220 = vmatprep.subr.bf16.mxu0 %v1786_v23  ;;  %v1815_v42 = vld [vmem:[%s2039_s19 + $0x280] ss:$20 sps:$4 sm:$0xff]   ;;  %v1821_v45 = vld [vmem:[%s2039_s19 + $0x4b0] ss:$20 sps:$4 sm:$0x1f]  }
  0x1b   : > { %1261 = vmatprep.subr.bf16.mxu1 %v1788_v24  ;;  %v1818_v44 = vld [vmem:[%s2039_s19 + $0x4b4] ss:$20 sps:$4 sm:$0x1f]   ;;  %v1200_v48 = vsel %vm1198_vm1, %v1821_v45, 0  ;;  %v1824_v49 = vld [vmem:[%s2039_s19 + $0x48c] ss:$20 sps:$4 sm:$0xff]  }
  0x1c   : > { %v1822_v47 = vld [vmem:[%s2039_s19 + $0x234] ss:$20 sps:$4 sm:$0xff]   ;;  %v1826_v50 = vld [vmem:[%s2039_s19 + $0x230] ss:$20 sps:$4 sm:$0xff]   ;;  %v1828_v52 = vld [vmem:[%s2039_s19 + $0x20c] ss:$20 sps:$4 sm:$0xff]  }
  0x1d   : > { %1221 = vmatpush1.bf16.msra.mxu0 %v1790_v25  ;;  %v1827_v51 = vld [vmem:[%s2039_s19 + $0x488] ss:$20 sps:$4 sm:$0xff]   ;;  %v1830_v53 = vld [vmem:[%s2039_s19 + $0x464] ss:$20 sps:$4 sm:$0xff]   ;;  %v1833_v55 = vld [vmem:[%s2039_s19 + $0x460] ss:$20 sps:$4 sm:$0xff]  }
  0x1e   : > { %1262 = vmatpush1.bf16.msra.mxu1 %v1791_v26  ;;  %1222 = vmatprep.subr.bf16.mxu0 %v1792_v27  ;;  %v1832_v54 = vld [vmem:[%s2039_s19 + $0x208] ss:$20 sps:$4 sm:$0xff]   ;;  %v1834_v56 = vld [vmem:[%s2039_s19 + $0x1e4] ss:$20 sps:$4 sm:$0xff]   ;;  %v1838_v58 = vld [vmem:[%s2039_s19 + $0x1e0] ss:$20 sps:$4 sm:$0xff]  }
  0x1f   : > { %1263 = vmatprep.subr.bf16.mxu1 %v1794_v28  ;;  %v1836_v57 = vld [vmem:[%s2039_s19 + $0x43c] ss:$20 sps:$4 sm:$0xff]   ;;  %v1839_v59 = vld [vmem:[%s2039_s19 + $0x438] ss:$20 sps:$4 sm:$0xff]   ;;  %v1842_v61 = vld [vmem:[%s2039_s19 + $0x414] ss:$20 sps:$4 sm:$0xff]  }
  0x20   : > { %v1840_v60 = vld [vmem:[%s2039_s19 + $0x1bc] ss:$20 sps:$4 sm:$0xff]   ;;  %v1844_v62 = vld [vmem:[%s2039_s19 + $0x1b8] ss:$20 sps:$4 sm:$0xff]   ;;  %v1846_v0 = vld [vmem:[%s2039_s19 + $0x194] ss:$20 sps:$4 sm:$0xff]  }
  0x21   : > { %1223 = vmatpush1.bf16.msra.mxu0 %v1796_v29  ;;  %v1845_v63 = vld [vmem:[%s2039_s19 + $0x410] ss:$20 sps:$4 sm:$0xff]   ;;  %v1848_v2 = vld [vmem:[%s2039_s19 + $0x3ec] ss:$20 sps:$4 sm:$0xff]   ;;  %v1851_v5 = vld [vmem:[%s2039_s19 + $0x3e8] ss:$20 sps:$4 sm:$0xff]  }
  0x22   : > { %1264 = vmatpush1.bf16.msra.mxu1 %v1797_v30  ;;  %1224 = vmatprep.subr.bf16.mxu0 %v1798_v31  ;;  %v1850_v3 = vld [vmem:[%s2039_s19 + $0x190] ss:$20 sps:$4 sm:$0xff]   ;;  %v1852_v6 = vld [vmem:[%s2039_s19 + $0x16c] ss:$20 sps:$4 sm:$0xff]   ;;  %v1856_v10 = vld [vmem:[%s2039_s19 + $0x168] ss:$20 sps:$4 sm:$0xff]  }
  0x23   : > { %1265 = vmatprep.subr.bf16.mxu1 %v1800_v32  ;;  %v1854_v9 = vld [vmem:[%s2039_s19 + $0x3c4] ss:$20 sps:$4 sm:$0xff]   ;;  %v1857_v12 = vld [vmem:[%s2039_s19 + $0x3c0] ss:$20 sps:$4 sm:$0xff]   ;;  %v1866_v1 = vld [vmem:[%s2039_s19 + $0xfc] ss:$20 sps:$4 sm:$0xff]  }
  0x24   : > { %v1858_v14 = vld [vmem:[%s2039_s19 + $0x144] ss:$20 sps:$4 sm:$0xff]   ;;  %v1860_v18 = vld [vmem:[%s2039_s19 + $0x120] ss:$20 sps:$4 sm:$0xff]   ;;  %v1875_v23 = vld [vmem:[%s2039_s19 + $0x37c] ss:$20 sps:$4 sm:$0xff]  }
  0x25   : > { %1225 = vmatpush1.bf16.msra.mxu0 %v1802_v33  ;;  %v1862_v16 = vld [vmem:[%s2039_s19 + $0x124] ss:$20 sps:$4 sm:$0xff]   ;;  %v1863_v19 = vld [vmem:[%s2039_s19 + $0x140] ss:$20 sps:$4 sm:$0xff]   ;;  %v1876_v28 = vld [vmem:[%s2039_s19 + $0xa8] ss:$20 sps:$4 sm:$0xff]  }
  0x26   : > { %1266 = vmatpush1.bf16.msra.mxu1 %v1803_v34  ;;  %1226 = vmatprep.subr.bf16.mxu0 %v1804_v35  ;;  %v1869_v7 = vld [vmem:[%s2039_s19 + $0x3a4] ss:$20 sps:$4 sm:$0xff]   ;;  %v1867_v21 = vld [vmem:[%s2039_s19 + $0x3a0] ss:$20 sps:$4 sm:$0xff]   ;;  %v1885_v33 = vld [vmem:[%s2039_s19 + $0x328] ss:$20 sps:$4 sm:$0xff]  }
  0x27   : > { %1267 = vmatprep.subr.bf16.mxu1 %v1806_v36  ;;  %v1864_v20 = vld [vmem:[%s2039_s19 + $0xf8] ss:$20 sps:$4 sm:$0xff]   ;;  %v1872_v22 = vld [vmem:[%s2039_s19 + $0xd4] ss:$20 sps:$4 sm:$0xff]   ;;  %v1870_v24 = vld [vmem:[%s2039_s19 + $0xd0] ss:$20 sps:$4 sm:$0xff]  }
  0x28   : > { %v1873_v25 = vld [vmem:[%s2039_s19 + $0x378] ss:$20 sps:$4 sm:$0xff]   ;;  %v1881_v27 = vld [vmem:[%s2039_s19 + $0x354] ss:$20 sps:$4 sm:$0xff]   ;;  %v1879_v29 = vld [vmem:[%s2039_s19 + $0x350] ss:$20 sps:$4 sm:$0xff]  }
  0x29   : > { %1227 = vmatpush1.bf16.msra.mxu0 %v1808_v37  ;;  %v1878_v26 = vld [vmem:[%s2039_s19 + $0xac] ss:$20 sps:$4 sm:$0xff]   ;;  %v1884_v30 = vld [vmem:[%s2039_s19 + $0x84] ss:$20 sps:$4 sm:$0xff]   ;;  %v1890_v34 = vld [vmem:[%s2039_s19 + $0x5c] ss:$20 sps:$4 sm:$0xff]  }
  0x2a   : > { %1268 = vmatpush1.bf16.msra.mxu1 %v1809_v38  ;;  %1228 = vmatprep.subr.bf16.mxu0 %v1810_v39  ;;  %v1887_v31 = vld [vmem:[%s2039_s19 + $0x32c] ss:$20 sps:$4 sm:$0xff]   ;;  %v1893_v35 = vld [vmem:[%s2039_s19 + $0x304] ss:$20 sps:$4 sm:$0xff]   ;;  %v1896_v38 = vld [vmem:[%s2039_s19 + $0x34] ss:$20 sps:$4 sm:$0xff]  }
  0x2b   : > { %1269 = vmatprep.subr.bf16.mxu1 %v1812_v40  ;;  %v1882_v32 = vld [vmem:[%s2039_s19 + $0x80] ss:$20 sps:$4 sm:$0xff]   ;;  %v1888_v36 = vld [vmem:[%s2039_s19 + $0x58] ss:$20 sps:$4 sm:$0xff]   ;;  %v1899_v39 = vld [vmem:[%s2039_s19 + $0x2dc] ss:$20 sps:$4 sm:$0xff]  }
  0x2c   : > { %v1891_v37 = vld [vmem:[%s2039_s19 + $0x300] ss:$20 sps:$4 sm:$0xff]   ;;  %v1894_v40 = vld [vmem:[%s2039_s19 + $0x30] ss:$20 sps:$4 sm:$0xff]   ;;  %v1900_v45 = vld [vmem:[%s2039_s19 + $0x8] ss:$20 sps:$4 sm:$0xff]  }
  0x2d   : > { %1229 = vmatpush1.bf16.msra.mxu0 %v1814_v41  ;;  %v1897_v41 = vld [vmem:[%s2039_s19 + $0x2d8] ss:$20 sps:$4 sm:$0xff]  }
  0x2e   : > { %1270 = vmatpush1.bf16.msra.mxu1 %v1815_v42  ;;  %1230 = vmatprep.subr.bf16.mxu0 %v1816_v43  ;;  %v1902_v42 = vld [vmem:[%s2039_s19 + $0xc] ss:$20 sps:$4 sm:$0xff]   ;;  %v1905_v43 = vld [vmem:[%s2039_s19 + $0x2b4] ss:$20 sps:$4 sm:$0xff]  }
  0x2f   : > { %1725 = vmatprep.subr.msk.bf16.mxu1 %vm1198_vm1, %v1818_v44  ;;  %v359_v44 = vld [vmem:[%s2263_s2] sm:$0x3] }
  0x30   : > { %362 = vperm.xlu0 %1767, %v359_v44   ;;  %v1972_v44 = vld [vmem:[%s2039_s19 + $0x4c0] ss:$20 sps:$4 sm:$0x1f]  }
  0x31   : > { %1231 = vmatpush2.bf16.msra.mxu0 %v1820_v46  ;;  %v1903_v46 = vld [vmem:[%s2039_s19 + $0x2b0] ss:$20 sps:$4 sm:$0xff]  }
  0x32   : > { %1274 = vmatpush2.bf16.msra.mxu1 %v1200_v48  ;;  %1232 = vmatprep.subr.bf16.mxu0 %v1822_v47  ;;  %v1908_v47 = vld [vmem:[%s2039_s19 + $0x264] ss:$20 sps:$4 sm:$0xff]   ;;  %v1911_v48 = vld [vmem:[%s2039_s19 + $0x28c] ss:$20 sps:$4 sm:$0xff]  }
  0x33   : > { %1275 = vmatprep.subr.bf16.mxu1 %v1824_v49  ;;  %v1917_v49 = vld [vmem:[%s2039_s19 + $0x4b8] ss:$20 sps:$4 sm:$0x1f]  }
  0x35   : > { %1233 = vmatpush2.bf16.msra.mxu0 %v1826_v50  ;;  %v1906_v50 = vld [vmem:[%s2039_s19 + $0x260] ss:$20 sps:$4 sm:$0xff]  }
  0x36   : > { %1276 = vmatpush2.bf16.msra.mxu1 %v1827_v51  ;;  %1234 = vmatprep.subr.bf16.mxu0 %v1828_v52  ;;  %v1915_v51 = vld [vmem:[%s2039_s19 + $0x4bc] ss:$20 sps:$4 sm:$0x1f]  }
  0x37   : > { %1277 = vmatprep.subr.bf16.mxu1 %v1830_v53  ;;  %v1909_v52 = vld [vmem:[%s2039_s19 + $0x288] ss:$20 sps:$4 sm:$0xff]  }
  0x38   : > { %v1914_v53 = vld [vmem:[%s2039_s19 + $0x23c] ss:$20 sps:$4 sm:$0xff]  }
  0x39   : > { %1235 = vmatpush2.bf16.msra.mxu0 %v1832_v54  ;;  %v1912_v54 = vld [vmem:[%s2039_s19 + $0x238] ss:$20 sps:$4 sm:$0xff]  }
  0x3a   : > { %1278 = vmatpush2.bf16.msra.mxu1 %v1833_v55  ;;  %1236 = vmatprep.subr.bf16.mxu0 %v1834_v56  ;;  %v1206_v55 = vsel %vm1198_vm1, %v1917_v49, 0  ;;  %v1920_v56 = vld [vmem:[%s2039_s19 + $0x214] ss:$20 sps:$4 sm:$0xff]  }
  0x3b   : > { %1279 = vmatprep.subr.bf16.mxu1 %v1836_v57  ;;  %v1923_v57 = vld [vmem:[%s2039_s19 + $0x494] ss:$20 sps:$4 sm:$0xff]  }
  0x3c   : > { %v1982_v49 = vld [vmem:[%s2039_s19 + $0x420] ss:$20 sps:$4 sm:$0xff]  }
  0x3d   : > { %1237 = vmatpush2.bf16.msra.mxu0 %v1838_v58  ;;  %v1918_v58 = vld [vmem:[%s2039_s19 + $0x210] ss:$20 sps:$4 sm:$0xff]  }
  0x3e   : > { %1280 = vmatpush2.bf16.msra.mxu1 %v1839_v59  ;;  %1238 = vmatprep.subr.bf16.mxu0 %v1840_v60  ;;  %v1921_v59 = vld [vmem:[%s2039_s19 + $0x490] ss:$20 sps:$4 sm:$0xff]   ;;  %v1926_v60 = vld [vmem:[%s2039_s19 + $0x1ec] ss:$20 sps:$4 sm:$0xff]  }
  0x3f   : > { %1281 = vmatprep.subr.bf16.mxu1 %v1842_v61  ;;  %v1929_v61 = vld [vmem:[%s2039_s19 + $0x46c] ss:$20 sps:$4 sm:$0xff]  }
  0x41   : > { %1239 = vmatpush2.bf16.msra.mxu0 %v1844_v62  ;;  %v1924_v62 = vld [vmem:[%s2039_s19 + $0x1e8] ss:$20 sps:$4 sm:$0xff]  }
  0x42   : > { %1282 = vmatpush2.bf16.msra.mxu1 %v1845_v63  ;;  %1240 = vmatprep.subr.bf16.mxu0 %v1846_v0  ;;  %v1927_v63 = vld [vmem:[%s2039_s19 + $0x468] ss:$20 sps:$4 sm:$0xff]   ;;  %v1932_v0 = vld [vmem:[%s2039_s19 + $0x1c4] ss:$20 sps:$4 sm:$0xff]  }
  0x43   : > { %1283 = vmatprep.subr.bf16.mxu1 %v1848_v2  ;;  %v1935_v2 = vld [vmem:[%s2039_s19 + $0x444] ss:$20 sps:$4 sm:$0xff]  }
  0x45   : > { %1241 = vmatpush2.bf16.msra.mxu0 %v1850_v3  ;;  %v1930_v3 = vld [vmem:[%s2039_s19 + $0x1c0] ss:$20 sps:$4 sm:$0xff]  }
  0x46   : > { %1284 = vmatpush2.bf16.msra.mxu1 %v1851_v5  ;;  %1242 = vmatprep.subr.bf16.mxu0 %v1852_v6  ;;  %v1933_v5 = vld [vmem:[%s2039_s19 + $0x440] ss:$20 sps:$4 sm:$0xff]   ;;  %v1938_v6 = vld [vmem:[%s2039_s19 + $0x19c] ss:$20 sps:$4 sm:$0xff]  }
  0x47   : > { %1285 = vmatprep.subr.bf16.mxu1 %v1854_v9  ;;  %v1941_v9 = vld [vmem:[%s2039_s19 + $0x41c] ss:$20 sps:$4 sm:$0xff]  }
  0x49   : > { %1243 = vmatpush2.bf16.msra.mxu0 %v1856_v10  ;;  %v1936_v10 = vld [vmem:[%s2039_s19 + $0x198] ss:$20 sps:$4 sm:$0xff]  }
  0x4a   : > { %1286 = vmatpush2.bf16.msra.mxu1 %v1857_v12  ;;  %1244 = vmatprep.subr.bf16.mxu0 %v1858_v14  ;;  %v1939_v12 = vld [vmem:[%s2039_s19 + $0x418] ss:$20 sps:$4 sm:$0xff]   ;;  %v1944_v14 = vld [vmem:[%s2039_s19 + $0x174] ss:$20 sps:$4 sm:$0xff]  }
  0x4b   : > { %1296 = vmatprep.subr.bf16.mxu1 %v1862_v16  ;;  %v1947_v16 = vld [vmem:[%s2039_s19 + $0x3f4] ss:$20 sps:$4 sm:$0xff]  }
  0x4d   : > { %1288 = vmatmul.mubr.bf16.vlgmr.msra.gmra.mxu1 %v2125_v17  ;;  %1245 = vmatpush2.bf16.msra.mxu0 %v1863_v19  ;;  %v1945_v19 = vld [vmem:[%s2039_s19 + $0x3f0] ss:$20 sps:$4 sm:$0xff]  }
  0x4e   : > { %1297 = vmatpush1.bf16.msra.mxu1 %v1860_v18  ;;  %1337 = vmatprep.subr.bf16.mxu0 %v1869_v7  ;;  %v1942_v18 = vld [vmem:[%s2039_s19 + $0x170] ss:$20 sps:$4 sm:$0xff]   ;;  %v1953_v7 = vld [vmem:[%s2039_s19 + $0x3cc] ss:$20 sps:$4 sm:$0xff]  }
  0x4f   : > { %1298 = vmatprep.subr.bf16.mxu1 %v1866_v1  ;;  %1328 = vmatprep.mubr.bf16.mxu1 %v2048_v11  ;;  %v1950_v1 = vld [vmem:[%s2039_s19 + $0x14c] ss:$20 sps:$4 sm:$0xff]  }
  0x50   : > { %1247 = vmatmul.mubr.bf16.vlgmr.msra.gmra.mxu0 %v2119_v13 }
  0x51   : > { %1338 = vmatpush1.bf16.msra.mxu0 %v1867_v21  ;;  %1728 = vmatprep.mubr.msk.bf16.mxu0 %vm1194_vm0, %v2055_v15  ;;  %v1951_v21 = vld [vmem:[%s2039_s19 + $0x3c8] ss:$20 sps:$4 sm:$0xff]  }
  0x52   : > { %1299 = vmatpush1.bf16.msra.mxu1 %v1864_v20  ;;  %1339 = vmatprep.subr.bf16.mxu0 %v1875_v23  ;;  %v1948_v20 = vld [vmem:[%s2039_s19 + $0x148] ss:$20 sps:$4 sm:$0xff]  }
  0x53   : > { %1300 = vmatprep.subr.bf16.mxu1 %v1872_v22  ;;  %v1958_v22 = vld [vmem:[%s2039_s19 + $0x268] ss:$20 sps:$4 sm:$0xff]  }
  0x54   : > { %v1954_v23 = vld [vmem:[%s2039_s19 + $0x3a8] ss:$20 sps:$4 sm:$0xff]  }
  0x55   : > { %1340 = vmatpush1.bf16.msra.mxu0 %v1873_v25  ;;  %v1961_v25 = vld [vmem:[%s2039_s19 + $0x240] ss:$20 sps:$4 sm:$0xff]  }
  0x56   : > { %1301 = vmatpush1.bf16.msra.mxu1 %v1870_v24  ;;  %1341 = vmatprep.subr.bf16.mxu0 %v1881_v27  ;;  %v1959_v24 = vld [vmem:[%s2039_s19 + $0x128] ss:$20 sps:$4 sm:$0xff]   ;;  %v1962_v27 = vld [vmem:[%s2039_s19 + $0x100] ss:$20 sps:$4 sm:$0xff]  }
  0x57   : > { %1302 = vmatprep.subr.bf16.mxu1 %v1878_v26  ;;  %v1955_v26 = vld [vmem:[%s2039_s19 + $0x380] ss:$20 sps:$4 sm:$0xff]  }
  0x59   : > { %1342 = vmatpush1.bf16.msra.mxu0 %v1879_v29  ;;  %v1956_v29 = vld [vmem:[%s2039_s19 + $0x358] ss:$20 sps:$4 sm:$0xff]  }
  0x5a   : > { %1303 = vmatpush1.bf16.msra.mxu1 %v1876_v28  ;;  %1343 = vmatprep.subr.bf16.mxu0 %v1887_v31  ;;  %v1964_v28 = vld [vmem:[%s2039_s19 + $0x218] ss:$20 sps:$4 sm:$0xff]   ;;  %v1967_v31 = vld [vmem:[%s2039_s19 + $0x1f0] ss:$20 sps:$4 sm:$0xff]  }
  0x5b   : > { %1304 = vmatprep.subr.bf16.mxu1 %v1884_v30  ;;  %v1965_v30 = vld [vmem:[%s2039_s19 + $0xd8] ss:$20 sps:$4 sm:$0xff]  }
  0x5d   : > { %1344 = vmatpush1.bf16.msra.mxu0 %v1885_v33  ;;  %v1960_v33 = vld [vmem:[%s2039_s19 + $0x308] ss:$20 sps:$4 sm:$0xff]  }
  0x5e   : > { %1305 = vmatpush1.bf16.msra.mxu1 %v1882_v32  ;;  %1345 = vmatprep.subr.bf16.mxu0 %v1893_v35  ;;  %v1957_v32 = vld [vmem:[%s2039_s19 + $0x330] ss:$20 sps:$4 sm:$0xff]   ;;  %v1973_v35 = vld [vmem:[%s2039_s19 + $0x1a0] ss:$20 sps:$4 sm:$0xff]  }
  0x5f   : > { %1306 = vmatprep.subr.bf16.mxu1 %v1890_v34  ;;  %v1971_v34 = vld [vmem:[%s2039_s19 + $0x88] ss:$20 sps:$4 sm:$0xff]  }
  0x61   : > { %1346 = vmatpush1.bf16.msra.mxu0 %v1891_v37  ;;  %v1974_v37 = vld [vmem:[%s2039_s19 + $0x60] ss:$20 sps:$4 sm:$0xff]  }
  0x62   : > { %1307 = vmatpush1.bf16.msra.mxu1 %v1888_v36  ;;  %1347 = vmatprep.subr.bf16.mxu0 %v1899_v39  ;;  %v1963_v36 = vld [vmem:[%s2039_s19 + $0x2e0] ss:$20 sps:$4 sm:$0xff]   ;;  %v1966_v39 = vld [vmem:[%s2039_s19 + $0x2b8] ss:$20 sps:$4 sm:$0xff]  }
  0x63   : > { %1308 = vmatprep.subr.bf16.mxu1 %v1896_v38  ;;  %v1976_v38 = vld [vmem:[%s2039_s19 + $0x178] ss:$20 sps:$4 sm:$0xff]  }
  0x65   : > { %1348 = vmatpush1.bf16.msra.mxu0 %v1897_v41  ;;  %v1979_v41 = vld [vmem:[%s2039_s19 + $0x150] ss:$20 sps:$4 sm:$0xff]  }
  0x66   : > { %1309 = vmatpush1.bf16.msra.mxu1 %v1894_v40  ;;  %1349 = vmatprep.subr.bf16.mxu0 %v1905_v43  ;;  %v1977_v40 = vld [vmem:[%s2039_s19 + $0x38] ss:$20 sps:$4 sm:$0xff]   ;;  %v1980_v43 = vld [vmem:[%s2039_s19 + $0x10] ss:$20 sps:$4 sm:$0xff]  }
  0x67   : > { %1310 = vmatprep.subr.bf16.mxu1 %v1902_v42  ;;  %v1969_v42 = vld [vmem:[%s2039_s19 + $0x290] ss:$20 sps:$4 sm:$0xff]  }
  0x69   : > { %1350 = vmatpush1.bf16.msra.mxu0 %v1903_v46  ;;  %v1975_v46 = vld [vmem:[%s2039_s19 + $0x498] ss:$20 sps:$4 sm:$0xff]  }
  0x6a   : > { %1311 = vmatpush1.bf16.msra.mxu1 %v1900_v45  ;;  %1351 = vmatprep.subr.bf16.mxu0 %v1911_v48  ;;  %v1212_v45 = vsel %vm1198_vm1, %v1972_v44, 0  ;;  %v1981_v48 = vld [vmem:[%s2039_s19 + $0x448] ss:$20 sps:$4 sm:$0xff]  }
  0x6b   : > { %1312 = vmatprep.subr.bf16.mxu1 %v1908_v47  ;;  %v1978_v47 = vld [vmem:[%s2039_s19 + $0x470] ss:$20 sps:$4 sm:$0xff]  }
  0x6d   : > { %1352 = vmatpush1.bf16.msra.mxu0 %v1909_v52 }
  0x6e   : > { %1313 = vmatpush2.bf16.msra.mxu1 %v1906_v50  ;;  %1727 = vmatprep.subr.msk.bf16.mxu0 %vm1198_vm1, %v1915_v51  ;;  %v1983_v50 = vld [vmem:[%s2039_s19 + $0x3f8] ss:$20 sps:$4 sm:$0xff]  }
  0x6f   : > { %1314 = vmatprep.subr.bf16.mxu1 %v1914_v53 }
  0x71   : > { %1356 = vmatpush2.bf16.msra.mxu0 %v1206_v55 }
  0x72   : > { %1315 = vmatpush2.bf16.msra.mxu1 %v1912_v54  ;;  %1357 = vmatprep.subr.bf16.mxu0 %v1923_v57 }
  0x73   : > { %1316 = vmatprep.subr.bf16.mxu1 %v1920_v56 }
  0x75   : > { %1358 = vmatpush2.bf16.msra.mxu0 %v1921_v59 }
  0x76   : > { %1317 = vmatpush2.bf16.msra.mxu1 %v1918_v58  ;;  %1359 = vmatprep.subr.bf16.mxu0 %v1929_v61 }
  0x77   : > { %1318 = vmatprep.subr.bf16.mxu1 %v1926_v60 }
  0x79   : > { %1360 = vmatpush2.bf16.msra.mxu0 %v1927_v63 }
  0x7a   : > { %1319 = vmatpush2.bf16.msra.mxu1 %v1924_v62  ;;  %1361 = vmatprep.subr.bf16.mxu0 %v1935_v2 }
  0x7b   : > { %1320 = vmatprep.subr.bf16.mxu1 %v1932_v0 }
  0x7d   : > { %1362 = vmatpush2.bf16.msra.mxu0 %v1933_v5  ;;  %v1995_v5 = vmov 1983009808  }
  0x7e   : > { %1321 = vmatpush2.bf16.msra.mxu1 %v1930_v3  ;;  %1363 = vmatprep.subr.bf16.mxu0 %v1941_v9 }
  0x7f   : > { %1322 = vmatprep.subr.bf16.mxu1 %v1938_v6  ;;  %v1481_v6 = vunpack.c.l.s4 %v1995_v5 }
  0x81   : > { %1364 = vmatpush2.bf16.msra.mxu0 %v1939_v12 }
  0x82   : > { %1323 = vmatpush2.bf16.msra.mxu1 %v1936_v10  ;;  %1365 = vmatprep.subr.bf16.mxu0 %v1947_v16 }
  0x83   : > { %1324 = vmatprep.subr.bf16.mxu1 %v1944_v14 }
  0x85   : > { %1366 = vmatpush2.bf16.msra.mxu0 %v1945_v19 }
  0x86   : > { %1325 = vmatpush2.bf16.msra.mxu1 %v1942_v18  ;;  %1367 = vmatprep.subr.bf16.mxu0 %v1953_v7 }
  0x87   : > { %1326 = vmatprep.subr.bf16.mxu1 %v1950_v1  ;;  %v1482_v1 = vunpack.c.0.s8 %v1481_v6 }
  0x89   : > { %1368 = vmatpush2.bf16.msra.mxu0 %v1951_v21 }
  0x8a   : > { %1327 = vmatpush2.bf16.msra.mxu1 %v1948_v20  ;;  %1732 = vmatprep.subr.bf16.mxu0 %v1958_v22 }
  0x8b   : > { %1418 = vmatprep.subr.bf16.mxu1 %v1994_v8 }
  0x8c   : > { %1370 = vmatmul.mubr.bf16.vlgmr.msra.gmra.mxu0 %v2125_v17 }
  0x8d   : > { %1329 = vmatmul.mubr.bf16.vlgmr.msra.gmra.mxu1 %v2119_v13  ;;  %1733 = vmatpush3.bf16.msra.mxu0 %v1959_v24 }
  0x8e   : > { %1419 = vmatpush1.bf16.msra.mxu1 %v1954_v23  ;;  %1734 = vmatprep.subr.bf16.mxu0 %v1961_v25 }
  0x8f   : > { %1420 = vmatprep.subr.bf16.mxu1 %v1994_v8  ;;  %1410 = vmatprep.mubr.bf16.mxu0 %v2048_v11  ;;  %v1968_v11 = vld [vmem:[%s2039_s19 + $0xb0] ss:$20 sps:$4 sm:$0xff]  }
  0x90   : > { %1729 = vmatprep.mubr.msk.bf16.mxu1 %vm1194_vm0, %v2055_v15  ;;  %v1970_v15 = vld [vmem:[%s2039_s19 + $0x1c8] ss:$20 sps:$4 sm:$0xff]  }
  0x91   : > { %1735 = vmatpush3.bf16.msra.mxu0 %v1962_v27 }
  0x92   : > { %1421 = vmatpush1.bf16.msra.mxu1 %v1955_v26  ;;  %1736 = vmatprep.subr.bf16.mxu0 %v1964_v28  ;;  %v1485_v26 = vsub.s32 %v1482_v1, %v2031_v4 }
  0x93   : > { %1422 = vmatprep.subr.bf16.mxu1 %v1994_v8 }
  0x95   : > { %1737 = vmatpush3.bf16.msra.mxu0 %v1965_v30 }
  0x96   : > { %1423 = vmatpush1.bf16.msra.mxu1 %v1956_v29  ;;  %1738 = vmatprep.subr.bf16.mxu0 %v1967_v31 }
  0x97   : > { %1424 = vmatprep.subr.bf16.mxu1 %v1994_v8 }
  0x99   : > { %1739 = vmatpush3.bf16.msra.mxu0 %v1968_v11 }
  0x9a   : > { %1425 = vmatpush1.bf16.msra.mxu1 %v1957_v32  ;;  %1740 = vmatprep.subr.bf16.mxu0 %v1970_v15 }
  0x9b   : > { %1426 = vmatprep.subr.bf16.mxu1 %v1994_v8 }
  0x9d   : > { %1741 = vmatpush3.bf16.msra.mxu0 %v1971_v34 }
  0x9e   : > { %1427 = vmatpush1.bf16.msra.mxu1 %v1960_v33  ;;  %1742 = vmatprep.subr.bf16.mxu0 %v1973_v35 }
  0x9f   : > { %1428 = vmatprep.subr.bf16.mxu1 %v1994_v8 }
  0xa1   : > { %1743 = vmatpush3.bf16.msra.mxu0 %v1974_v37 }
  0xa2   : > { %1429 = vmatpush1.bf16.msra.mxu1 %v1963_v36  ;;  %1744 = vmatprep.subr.bf16.mxu0 %v1976_v38 }
  0xa3   : > { %1430 = vmatprep.subr.bf16.mxu1 %v1994_v8 }
  0xa5   : > { %1745 = vmatpush3.bf16.msra.mxu0 %v1977_v40 }
  0xa6   : > { %1431 = vmatpush1.bf16.msra.mxu1 %v1966_v39  ;;  %1746 = vmatprep.subr.bf16.mxu0 %v1979_v41 }
  0xa7   : > { %1432 = vmatprep.subr.bf16.mxu1 %v1994_v8 }
  0xa9   : > { %1747 = vmatpush3.bf16.msra.mxu0 %v1980_v43 }
  0xaa   : > { %1433 = vmatpush1.bf16.msra.mxu1 %v1969_v42 }
  0xab   : > { %1436 = vmatprep.subr.bf16.mxu1 %v1994_v8  ;;  %v363_v53 = vpop.permute.xlu0 %362 }
  0xac   : > { %1411 = vmatmul.mubr.bf16.vlgmr.msra.gmra.mxu0 %v2119_v13  ;;  %v1984_v13 = vld [vmem:[%s2039_s19 + $0x3d0] ss:$20 sps:$4 sm:$0xff]  }
  0xae   : > { %1437 = vmatpush2.bf16.msra.mxu1 %v1212_v45 }
  0xaf   : > { %1438 = vmatprep.subr.bf16.mxu1 %v1994_v8 }
  0xb2   : > { %1439 = vmatpush2.bf16.msra.mxu1 %v1975_v46 }
  0xb3   : > { %1440 = vmatprep.subr.bf16.mxu1 %v1994_v8 }
  0xb6   : > { %1441 = vmatpush2.bf16.msra.mxu1 %v1978_v47 }
  0xb7   : > { %1442 = vmatprep.subr.bf16.mxu1 %v1994_v8 }
  0xba   : > { %1443 = vmatpush2.bf16.msra.mxu1 %v1981_v48 }
  0xbb   : > { %1444 = vmatprep.subr.bf16.mxu1 %v1994_v8 }
  0xbe   : > { %1445 = vmatpush2.bf16.msra.mxu1 %v1982_v49 }
  0xbf   : > { %1446 = vmatprep.subr.bf16.mxu1 %v1994_v8 }
  0xc2   : > { %1447 = vmatpush2.bf16.msra.mxu1 %v1983_v50 }
  0xc3   : > { %1448 = vmatprep.subr.bf16.mxu1 %v1994_v8 }
  0xc6   : > { %1449 = vmatpush2.bf16.msra.mxu1 %v1984_v13 }
  0xc9   : > { %1451 = vmatmul.mubr.bf16.vlgmr.msra.gmra.mxu1 %v2125_v17 }
 0x10d   : > { %v1289_v51 = vpop.f32.mrf.mxu1 }
 0x10f   : > { %v1291_v52 = vpop.f32.mrf.mxu1 }
 0x110   : > { %v1248_v54 = vpop.f32.mrf.mxu0 }
 0x111   : > { %v1293_v55 = vpop.f32.mrf.mxu1  ;;  %v1249_v56 = vadd.f32 %v1248_v54, %v363_v53 }
 0x112   : > { %v1250_v57 = vpop.f32.mrf.mxu0 }
 0x113   : > { %v1294_v58 = vpop.f32.mrf.mxu1  ;;  %v1290_v59 = vadd.f32 %v1289_v51, %v1249_v56  ;;  %v1251_v60 = vadd.f32 %v1250_v57, %v363_v53 }
 0x114   : > { %v1252_v61 = vpop.f32.mrf.mxu0 }
 0x115   : > { %v1463_v62 = vmul.f32 2.0, %v1290_v59  ;;  %v1292_v63 = vadd.f32 %v1291_v52, %v1251_v60  ;;  %vm1458_vm2 = vcmp.gt.f32.partialorder %v1290_v59, 0.0 }
 0x116   : > { %v1253_v0 = vpop.f32.mrf.mxu0 }
 0x117   : > { %vm1459_vm3 = vcmp.gt.f32.partialorder %v1292_v63, 0.0  ;;  %v1464_v8 = vmul.f32 2.0, %v1292_v63  ;;  %v1468_v2 = vsel %vm1458_vm2, %v1290_v59, %v1463_v62 }
 0x119   : > { %v1469_v3 = vsel %vm1459_vm3, %v1292_v63, %v1464_v8 }
 0x11a   : > { %v1478_v17 = vcombine.low %v1468_v2, %v1469_v3 }
 0x11c   : > { %v1486_v30 = vrot.slane %v1478_v17, %v1485_v26 }
 0x14c   : > { %v1371_v10 = vpop.f32.mrf.mxu0 }
 0x14d   : > { %v1330_v9 = vpop.f32.mrf.mxu1 }
 0x14e   : > { %v1331_v12 = vadd.f32 %v1330_v9, %v363_v53  ;;  %v1373_v16 = vpop.f32.mrf.mxu0 }
 0x14f   : > { %v1332_v14 = vpop.f32.mrf.mxu1 }
 0x150   : > { %v1333_v18 = vadd.f32 %v1332_v14, %v363_v53  ;;  %v1372_v19 = vadd.f32 %v1371_v10, %v1331_v12  ;;  %v1375_v20 = vpop.f32.mrf.mxu0 }
 0x151   : > { %v1334_v7 = vpop.f32.mrf.mxu1 }
 0x152   : > { %v1465_v21 = vmul.f32 2.0, %v1372_v19  ;;  %v1374_v22 = vadd.f32 %v1373_v16, %v1333_v18  ;;  %vm1460_vm4 = vcmp.gt.f32.partialorder %v1372_v19, 0.0  ;;  %v1376_v24 = vpop.f32.mrf.mxu0 }
 0x153   : > { %v1335_v23 = vpop.f32.mrf.mxu1 }
 0x154   : > { %vm1461_vm5 = vcmp.gt.f32.partialorder %v1374_v22, 0.0  ;;  %v1466_v25 = vmul.f32 2.0, %v1374_v22  ;;  %v1470_v27 = vsel %vm1460_vm4, %v1372_v19, %v1465_v21 }
 0x156   : > { %v1471_v28 = vsel %vm1461_vm5, %v1374_v22, %v1466_v25 }
 0x157   : > { %v1479_v29 = vcombine.low %v1470_v27, %v1471_v28 }
 0x159   : > { %v1493_v31 = vrot.slane %v1479_v29, %v1485_v26 }
 0x15b   : > { %v1494_v32 = vcombine.low %v1486_v30, %v1493_v31 }
 0x15d   : > { %1504 = vst [vmem:[%s170_s25] sm:$0xff] %v1494_v32 }
 0x16c   : > { %v1748_v11 = vpop.f32.mrf.mxu0 }
 0x16e   : > { %v1749_v15 = vpop.f32.mrf.mxu0 }
 0x16f   : > { %v1750_v35 = vadd.f32 %v1749_v15, %v1748_v11 }
 0x170   : > { %v1751_v33 = vpop.f32.mrf.mxu0 }
 0x171   : > { %v1413_v36 = vadd.f32 %v1750_v35, %v363_v53 }
 0x172   : > { %v1752_v34 = vpop.f32.mrf.mxu0 }
 0x189   : > { %v1452_v37 = vpop.f32.mrf.mxu1 }
 0x18a   : > { %v1453_v4 = vadd.f32 %v1452_v37, %v1413_v36 }
 0x18b   : > { %v1454_v38 = vpop.f32.mrf.mxu1 }
 0x18c   : > { %vm1462_vm6 = vcmp.gt.f32.partialorder %v1453_v4, 0.0  ;;  %v1467_v39 = vmul.f32 2.0, %v1453_v4 }
 0x18d   : > { %v1455_v40 = vpop.f32.mrf.mxu1 }
 0x18e   : > { %v1472_v41 = vsel %vm1462_vm6, %v1453_v4, %v1467_v39 }
 0x18f   : > { %v1501_v42 = vrot.slane %v1472_v41, %v1485_v26  ;;  %v1456_v43 = vpop.f32.mrf.mxu1 }
 0x191   : > { %1506 = vst.msk [vmem:[%s170_s25 + $0x8] sm:$0x3] %vm1505_vm7, %v1501_v42 }
 0x192 PF: > { %s13_s12 = sadd.s32 1, %s1991_s12  }
 0x193   : > { %p10_p4 = scmp.ge.s32.totalorder %s13_s12, 4  }
 0x195   :  { %12 = sbr.rel (!%p10_p4) target bundleno = 1 (0x1), region = 62 }

</bundles_post_ra>
